<compile_context>
chip_gen: v5e
topology: v5e:2x2
jax: 0.10.0
libtpu: 0.0.40
codegen_flags: <defaults>
</compile_context>

<pallas_src>
import math
import functools

import numpy as np
import jax
import jax.numpy as jnp
from jax.experimental import pallas as pl
from jax.experimental.pallas import tpu as pltpu

LEAKY_SLOPE = 0.2
LN_EPS = 1e-5


def _round_up(x, m):
    return (x + m - 1) // m * m


# ------------------------------ Pallas kernel ------------------------------ #
def _text_decoder_kernel(gate_pad, out_pad,
                         pos_ref,                       # scalar prefetch (only used by index_maps)
                         x_ref, pe_ref, h0_ref, eps_ref,
                         embW_ref, lnpack_ref, WihAll_ref, WhhBD_ref,
                         headW_ref, bpack_ref,
                         out_ref, hout_ref,
                         h_scr):
    del pos_ref
    G, OP = gate_pad, out_pad
    t = pl.program_id(0)

    # load the initial hidden into the resident VMEM scratch on the first step
    @pl.when(t == 0)
    def _():
        h_scr[...] = h0_ref[...]

    x = x_ref[0]                  # (B, IN)
    pe = pe_ref[0]                # (1, H)
    eps = eps_ref[0]              # (B, OP)

    lnp = lnpack_ref[...]         # (8, H): rows = emb_b, ln_g, ln_b, pad
    emb_b = lnp[0:1, :]
    ln_g = lnp[1:2, :]
    ln_b = lnp[2:3, :]

    b_all = bpack_ref[:, 0:3 * G]                     # (1, 3G)  r/z: bih+bhh folded, n: bih
    bhh_n = bpack_ref[:, 3 * G:4 * G]                 # (1, G)
    head_b = bpack_ref[:, 4 * G:4 * G + 2 * OP]       # (1, 2*OP)

    # emb: Linear -> LayerNorm (single-pass stats) -> LeakyReLU(0.2)
    e = jnp.dot(x, embW_ref[...], preferred_element_type=jnp.float32) + emb_b
    s1 = jnp.mean(e, axis=-1, keepdims=True)
    s2 = jnp.mean(e * e, axis=-1, keepdims=True)
    e = (e - s1) * jax.lax.rsqrt(s2 - s1 * s1 + LN_EPS) * ln_g + ln_b
    e = jnp.where(e > 0, e, LEAKY_SLOPE * e)
    x_in = e + pe                                     # (B, H)

    h = h_scr[...]                                    # (B, G) lane-dense layer-stacked hidden

    # fused gate projections; gate-major, 128-aligned blocks [all-r | all-z | all-n]
    X = jnp.dot(x_in, WihAll_ref[...], preferred_element_type=jnp.float32) + b_all   # (B, 3G)
    Gh = jnp.dot(h, WhhBD_ref[...], preferred_element_type=jnp.float32)              # (B, 3G)

    rz = jax.nn.sigmoid(X[:, 0:2 * G] + Gh[:, 0:2 * G])
    r = rz[:, 0:G]
    zg = rz[:, G:2 * G]
    n = jnp.tanh(X[:, 2 * G:3 * G] + r * (Gh[:, 2 * G:3 * G] + bhh_n))
    h_new = (1.0 - zg) * n + zg * h
    h_scr[...] = h_new

    # mu/logvar head: head_W's nonzero rows are only the last layer's hidden block
    head = jnp.dot(h_new, headW_ref[...], preferred_element_type=jnp.float32) + head_b  # (B, 2*OP)
    mu = head[:, 0:OP]
    lv = head[:, OP:2 * OP]
    z = eps * jnp.exp(0.5 * lv) + mu

    # one lane-dense output slab per step: [z | mu | logvar]
    out_ref[0] = jnp.concatenate([z, mu, lv], axis=-1)

    @pl.when(t == pl.num_programs(0) - 1)
    def _():
        hout_ref[...] = h_new


# ------------------------ fused-parameter preparation ----------------------- #
def prepare_fused_params(params, pe_table, n_layers, hidden_size, output_size):
    """Restack PyTorch-style per-gate weights into gate-major, 128-lane-aligned
    fused blocks (plus a block-diagonal hidden->gates matrix over layers)."""
    L, H, O = n_layers, hidden_size, output_size
    G = _round_up(L * H, 128)     # padded lane width of one gate block
    OP = _round_up(O, 128)        # padded lane width of one head output block

    Wih = np.asarray(params["gru_Wih"])   # (3L, H, H), per layer [r, z, n]
    Whh = np.asarray(params["gru_Whh"])   # (3L, H, H)
    bih = np.asarray(params["gru_bih"])   # (3L, 1, H)
    bhh = np.asarray(params["gru_bhh"])   # (3L, 1, H)

    Wih_all = np.zeros((H, 3 * G), np.float32)      # x_in -> all gates, all layers
    b_all = np.zeros((1, 3 * G), np.float32)
    Whh_bd = np.zeros((G, 3 * G), np.float32)       # block-diagonal hidden -> gates
    bhh_n = np.zeros((1, G), np.float32)
    for i in range(L):
        rows = slice(i * H, (i + 1) * H)
        for g in range(3):
            cols = slice(g * G + i * H, g * G + (i + 1) * H)
            Wih_all[:, cols] = Wih[3 * i + g]
            Whh_bd[rows, cols] = Whh[3 * i + g]
            if g < 2:   # r, z: hidden-side bias folds into the input-side bias
                b_all[:, cols] = bih[3 * i + g] + bhh[3 * i + g]
            else:       # n: bhh_n must stay inside r * (...)
                b_all[:, cols] = bih[3 * i + g]
        bhh_n[:, i * H:(i + 1) * H] = bhh[3 * i + 2]

    # mu/logvar head reads only the LAST layer's hidden block (padded to 128 lanes each)
    head_W = np.zeros((G, 2 * OP), np.float32)
    head_b = np.zeros((1, 2 * OP), np.float32)
    last = slice((L - 1) * H, L * H)
    head_W[last, 0:O] = np.asarray(params["mu_W"])
    head_W[last, OP:OP + O] = np.asarray(params["lv_W"])
    head_b[:, 0:O] = np.asarray(params["mu_b"])
    head_b[:, OP:OP + O] = np.asarray(params["lv_b"])

    # small vectors packed: one (8, H) sublane tile + one 128-aligned lane vector
    ln_pack = np.zeros((8, H), np.float32)
    ln_pack[0] = np.asarray(params["emb_b"])[0]
    ln_pack[1] = np.asarray(params["ln_g"])[0]
    ln_pack[2] = np.asarray(params["ln_b"])[0]
    b_pack = np.concatenate([b_all, bhh_n, head_b], axis=1)   # (1, 4G + 2*OP)

    # TODO(synk): for large H/L configs cast Wih_all/Whh_bd/head_W/emb_W to
    # bfloat16 here (halves weight DMA + VMEM, v7x 64 MiB budget) and keep
    # preferred_element_type=f32 in the kernel dots.
    return {
        "n_layers": L, "hidden_size": H, "output_size": O,
        "gate_pad": G, "out_pad": OP,
        "emb_W": jnp.asarray(params["emb_W"], jnp.float32),
        "ln_pack": jnp.asarray(ln_pack),
        "Wih_all": jnp.asarray(Wih_all),
        "Whh_bd": jnp.asarray(Whh_bd),
        "head_W": jnp.asarray(head_W),
        "b_pack": jnp.asarray(b_pack),
        "pe_table": jnp.asarray(pe_table, jnp.float32)[:, None, :],   # (max_len, 1, H)
    }


# -------------------------------- host wrapper ------------------------------ #
def text_decoder_decode(fused, inputs_seq, h0_flat, pos_idx, eps_seq):
    """Run T decode steps (the module's forward applied T times) in one launch.

    inputs_seq: (T, B, input_size) per-step inputs
    h0_flat   : (B, L*H)           initial hidden (z2init output, layer-major, un-split)
    pos_idx   : (T,) int32         positional-encoding index for each step
    eps_seq   : (T, B, O)          N(0,1) draws for reparameterize
    returns   : z, mu, logvar with shape (T, B, O) and the final hidden (B, L*H)
    """
    T, B, IN = inputs_seq.shape
    L, H, O = fused["n_layers"], fused["hidden_size"], fused["output_size"]
    G, OP = fused["gate_pad"], fused["out_pad"]
    LH = L * H

    h0 = jnp.pad(h0_flat.astype(jnp.float32), ((0, 0), (0, G - LH)))
    eps = jnp.pad(eps_seq.astype(jnp.float32), ((0, 0), (0, 0), (0, OP - O)))
    pe3 = fused["pe_table"]                                   # (max_len, 1, H)

    const2 = lambda t, pos: (0, 0)
    grid_spec = pltpu.PrefetchScalarGridSpec(
        num_scalar_prefetch=1,
        grid=(T,),
        in_specs=[
            pl.BlockSpec((1, B, IN), lambda t, pos: (t, 0, 0)),        # inputs_seq
            pl.BlockSpec((1, 1, H), lambda t, pos: (pos[t], 0, 0)),    # pos-enc row (scalar prefetch)
            pl.BlockSpec((B, G), const2),                              # h0 (loaded once)
            pl.BlockSpec((1, B, OP), lambda t, pos: (t, 0, 0)),        # eps_seq
            pl.BlockSpec(fused["emb_W"].shape, const2),                # weights: resident across T
            pl.BlockSpec(fused["ln_pack"].shape, const2),
            pl.BlockSpec(fused["Wih_all"].shape, const2),
            pl.BlockSpec(fused["Whh_bd"].shape, const2),
            pl.BlockSpec(fused["head_W"].shape, const2),
            pl.BlockSpec(fused["b_pack"].shape, const2),
        ],
        out_specs=[
            pl.BlockSpec((1, B, 3 * OP), lambda t, pos: (t, 0, 0)),    # [z | mu | logvar] slab
            pl.BlockSpec((B, G), const2),                              # final hidden (resident)
        ],
        scratch_shapes=[pltpu.VMEM((B, G), jnp.float32)],              # hidden carried across T
    )

    out_shape = (
        jax.ShapeDtypeStruct((T, B, 3 * OP), jnp.float32),
        jax.ShapeDtypeStruct((B, G), jnp.float32),
    )

    kernel = functools.partial(_text_decoder_kernel, G, OP)
    out, hout = pl.pallas_call(
        kernel,
        grid_spec=grid_spec,
        out_shape=out_shape,
        compiler_params=pltpu.CompilerParams(
            # T is a recurrence -> "arbitrary". For a large independent batch a
            # second "parallel" grid axis would use v7x's 2nd TensorCore; at
            # B=8 it is not worthwhile.
            dimension_semantics=("arbitrary",),
            vmem_limit_bytes=32 * 1024 * 1024,
        ),
    )(pos_idx, inputs_seq.astype(jnp.float32), pe3, h0, eps,
      fused["emb_W"], fused["ln_pack"], fused["Wih_all"], fused["Whh_bd"],
      fused["head_W"], fused["b_pack"])

    z = out[:, :, 0:O]
    mu = out[:, :, OP:OP + O]
    logvar = out[:, :, 2 * OP:2 * OP + O]
    new_hidden = hout[:, :LH]
    return z, mu, logvar, new_hidden


# --------------------------- parameter construction ------------------------- #
def make_pos_encoding(d_model, max_len=300):
    position = np.arange(max_len, dtype=np.float32)[:, None]
    div_term = np.exp(np.arange(0, d_model, 2, dtype=np.float32)
                      * (-math.log(10000.0) / d_model))
    pe = np.zeros((max_len, d_model), np.float32)
    pe[:, 0::2] = np.sin(position * div_term)
    pe[:, 1::2] = np.cos(position * div_term)
    return jnp.asarray(pe)


def _xavier_normal(key, fan_in, fan_out):
    std = math.sqrt(2.0 / (fan_in + fan_out))
    return std * jax.random.normal(key, (fan_in, fan_out), jnp.float32)


def init_params(key, text_size, input_size, output_size, hidden_size, n_layers):
    ks = jax.random.split(key, 10)
    k_gru = 1.0 / math.sqrt(hidden_size)   # PyTorch GRUCell default init range
    return {
        "emb_W": _xavier_normal(ks[0], input_size, hidden_size),
        "emb_b": jnp.zeros((1, hidden_size), jnp.float32),
        "ln_g": jnp.ones((1, hidden_size), jnp.float32),
        "ln_b": jnp.zeros((1, hidden_size), jnp.float32),
        "gru_Wih": jax.random.uniform(ks[1], (3 * n_layers, hidden_size, hidden_size),
                                      jnp.float32, -k_gru, k_gru),
        "gru_Whh": jax.random.uniform(ks[2], (3 * n_layers, hidden_size, hidden_size),
                                      jnp.float32, -k_gru, k_gru),
        "gru_bih": jax.random.uniform(ks[3], (3 * n_layers, 1, hidden_size),
                                      jnp.float32, -k_gru, k_gru),
        "gru_bhh": jax.random.uniform(ks[4], (3 * n_layers, 1, hidden_size),
                                      jnp.float32, -k_gru, k_gru),
        "mu_W": _xavier_normal(ks[5], hidden_size, output_size),
        "mu_b": jnp.zeros((1, output_size), jnp.float32),
        "lv_W": _xavier_normal(ks[6], hidden_size, output_size),
        "lv_b": jnp.zeros((1, output_size), jnp.float32),
        "z2init_W": _xavier_normal(ks[7], text_size, hidden_size * n_layers),
        "z2init_b": jnp.zeros((1, hidden_size * n_layers), jnp.float32),
    }


def get_init_hidden(params, latent):
    # mirrors TextDecoder.get_init_hidden but keeps (B, L*H) lane-dense layout
    # (layer-major along the last dim), which is exactly what z2init produces.
    return latent @ params["z2init_W"] + params["z2init_b"]


# ------------------------------ pure-JAX reference -------------------------- #
def _hdot(a, b):
    return jnp.dot(a, b, precision=jax.lax.Precision.HIGHEST)


def reference_forward(params, inputs, hidden, pos_enc, eps):
    """One step of the PyTorch TextDecoder.forward (hidden stacked (L, B, H))."""
    e = _hdot(inputs, params["emb_W"]) + params["emb_b"]
    mean = e.mean(-1, keepdims=True)
    var = ((e - mean) ** 2).mean(-1, keepdims=True)
    e = (e - mean) / jnp.sqrt(var + LN_EPS) * params["ln_g"] + params["ln_b"]
    e = jnp.where(e > 0, e, LEAKY_SLOPE * e)
    x_in = e + pos_enc
    L = hidden.shape[0]
    h_out = []
    h_in = x_in
    for i in range(L):
        h = hidden[i]
        xr = _hdot(x_in, params["gru_Wih"][3 * i + 0]) + params["gru_bih"][3 * i + 0]
        xz = _hdot(x_in, params["gru_Wih"][3 * i + 1]) + params["gru_bih"][3 * i + 1]
        xn = _hdot(x_in, params["gru_Wih"][3 * i + 2]) + params["gru_bih"][3 * i + 2]
        hr = _hdot(h, params["gru_Whh"][3 * i + 0]) + params["gru_bhh"][3 * i + 0]
        hz = _hdot(h, params["gru_Whh"][3 * i + 1]) + params["gru_bhh"][3 * i + 1]
        hn = _hdot(h, params["gru_Whh"][3 * i + 2]) + params["gru_bhh"][3 * i + 2]
        r = jax.nn.sigmoid(xr + hr)
        zg = jax.nn.sigmoid(xz + hz)
        n = jnp.tanh(xn + r * hn)
        h_new = (1.0 - zg) * n + zg * h
        h_out.append(h_new)
        h_in = h_new
    mu = _hdot(h_in, params["mu_W"]) + params["mu_b"]
    lv = _hdot(h_in, params["lv_W"]) + params["lv_b"]
    z = eps * jnp.exp(0.5 * lv) + mu
    return z, mu, lv, jnp.stack(h_out)


# ------------------------------------ main ---------------------------------- #
if __name__ == "__main__":
    TEXT_SIZE, INPUT_SIZE, OUTPUT_SIZE, HIDDEN_SIZE, N_LAYERS = 16, 24, 16, 32, 2
    BATCH, T = 8, 6                     # batch = full f32 sublane tile

    key = jax.random.PRNGKey(0)
    k_par, k_x, k_lat, k_eps = jax.random.split(key, 4)

    params = init_params(k_par, TEXT_SIZE, INPUT_SIZE, OUTPUT_SIZE, HIDDEN_SIZE, N_LAYERS)
    pe_table = make_pos_encoding(HIDDEN_SIZE, max_len=300)
    fused = prepare_fused_params(params, pe_table, N_LAYERS, HIDDEN_SIZE, OUTPUT_SIZE)

    inputs_seq = jax.random.normal(k_x, (T, BATCH, INPUT_SIZE), jnp.float32)
    latent = jax.random.normal(k_lat, (BATCH, TEXT_SIZE), jnp.float32)
    eps_seq = jax.random.normal(k_eps, (T, BATCH, OUTPUT_SIZE), jnp.float32)
    pos_idx = jnp.arange(T, dtype=jnp.int32)          # autoregressive positions 0..T-1

    h0_flat = get_init_hidden(params, latent)         # (B, L*H)

    # reference: the module's forward applied step by step (hidden threaded)
    hid = jnp.transpose(h0_flat.reshape(BATCH, N_LAYERS, HIDDEN_SIZE), (1, 0, 2))
    z_r, mu_r, lv_r = [], [], []
    for t in range(T):
        pe_row = pe_table[int(pos_idx[t])][None, :]
        zt, mt, lt, hid = reference_forward(params, inputs_seq[t], hid, pe_row, eps_seq[t])
        z_r.append(zt); mu_r.append(mt); lv_r.append(lt)
    z_r, mu_r, lv_r = jnp.stack(z_r), jnp.stack(mu_r), jnp.stack(lv_r)
    h_r = jnp.transpose(hid, (1, 0, 2)).reshape(BATCH, N_LAYERS * HIDDEN_SIZE)
    jax.block_until_ready((z_r, mu_r, lv_r, h_r))

    z, mu, logvar, new_hidden = text_decoder_decode(fused, inputs_seq, h0_flat, pos_idx, eps_seq)
    jax.block_until_ready((z, mu, logvar, new_hidden))

    # tolerance covers MXU f32 multi-pass rounding only (was 1e-2 before)
    for name, got, want in (("z", z, z_r), ("mu", mu, mu_r),
                            ("logvar", logvar, lv_r), ("hidden", new_hidden, h_r)):
        max_err = float(jnp.abs(got - want).max())
        assert jnp.allclose(got, want, atol=5e-4, rtol=5e-4), (name, max_err)

    print("KERNEL_OK")
</pallas_src>

<mosaic_0001>
module attributes {stable_mosaic.version = 11 : i64} {
  func.func @_text_decoder_kernel(%arg0: i32, %arg1: memref<6xi32, #tpu.memory_space<smem>>, %arg2: memref<1x8x24xf32, #tpu.memory_space<vmem>>, %arg3: memref<1x1x32xf32, #tpu.memory_space<vmem>>, %arg4: memref<8x128xf32, #tpu.memory_space<vmem>>, %arg5: memref<1x8x128xf32, #tpu.memory_space<vmem>>, %arg6: memref<24x32xf32, #tpu.memory_space<vmem>>, %arg7: memref<8x32xf32, #tpu.memory_space<vmem>>, %arg8: memref<32x384xf32, #tpu.memory_space<vmem>>, %arg9: memref<128x384xf32, #tpu.memory_space<vmem>>, %arg10: memref<128x256xf32, #tpu.memory_space<vmem>>, %arg11: memref<1x768xf32, #tpu.memory_space<vmem>>, %arg12: memref<1x8x384xf32, #tpu.memory_space<vmem>>, %arg13: memref<8x128xf32, #tpu.memory_space<vmem>>, %arg14: memref<8x128xf32, #tpu.memory_space<vmem>>) attributes {dimension_semantics = [#tpu.dimension_semantics<arbitrary>], iteration_bounds = array<i64: 6>, scalar_prefetch = 1 : i64, scratch_operands = 1 : i64, tpu.core_type = #tpu.core_type<tc>, window_params = [{transform_indices = @transform_0, window_bounds = array<i64: 1, 8, 24>}, {transform_indices = @transform_1, window_bounds = array<i64: 1, 1, 32>}, {pipeline_mode = #tpu.pipeline_mode<synchronous>, transform_indices = @transform_2, window_bounds = array<i64: 8, 128>}, {transform_indices = @transform_3, window_bounds = array<i64: 1, 8, 128>}, {pipeline_mode = #tpu.pipeline_mode<synchronous>, transform_indices = @transform_4, window_bounds = array<i64: 24, 32>}, {pipeline_mode = #tpu.pipeline_mode<synchronous>, transform_indices = @transform_5, window_bounds = array<i64: 8, 32>}, {pipeline_mode = #tpu.pipeline_mode<synchronous>, transform_indices = @transform_6, window_bounds = array<i64: 32, 384>}, {pipeline_mode = #tpu.pipeline_mode<synchronous>, transform_indices = @transform_7, window_bounds = array<i64: 128, 384>}, {pipeline_mode = #tpu.pipeline_mode<synchronous>, transform_indices = @transform_8, window_bounds = array<i64: 128, 256>}, {pipeline_mode = #tpu.pipeline_mode<synchronous>, transform_indices = @transform_9, window_bounds = array<i64: 1, 768>}, {transform_indices = @transform_10, window_bounds = array<i64: 1, 8, 384>}, {pipeline_mode = #tpu.pipeline_mode<synchronous>, transform_indices = @transform_11, window_bounds = array<i64: 8, 128>}]} {
    %c0_i32 = arith.constant 0 : i32
    %0 = arith.cmpi eq, %arg0, %c0_i32 : i32
    %1 = arith.extui %0 : i1 to i32
    %c0_i32_0 = arith.constant 0 : i32
    %2 = arith.cmpi ne, %1, %c0_i32_0 : i32
    scf.if %2 {
      %c0_44 = arith.constant 0 : index
      %c0_45 = arith.constant 0 : index
      %97 = vector.load %arg4[%c0_44, %c0_45] : memref<8x128xf32, #tpu.memory_space<vmem>>, vector<8x128xf32>
      %c0_46 = arith.constant 0 : index
      %c0_47 = arith.constant 0 : index
      %98 = vector.load %arg14[%c0_46, %c0_47] : memref<8x128xf32, #tpu.memory_space<vmem>>, vector<8x128xf32>
      tpu.vector_store %arg14[%c0_46, %c0_47], %97 {strides = array<i32>} : memref<8x128xf32, #tpu.memory_space<vmem>>, vector<8x128xf32>,
    } else {
    }
    %c0 = arith.constant 0 : index
    %c0_1 = arith.constant 0 : index
    %c0_2 = arith.constant 0 : index
    %3 = vector.load %arg2[%c0, %c0_1, %c0_2] : memref<1x8x24xf32, #tpu.memory_space<vmem>>, vector<1x8x24xf32>
    %4 = vector.shape_cast %3 : vector<1x8x24xf32> to vector<8x24xf32>
    %c0_3 = arith.constant 0 : index
    %c0_4 = arith.constant 0 : index
    %c0_5 = arith.constant 0 : index
    %5 = vector.load %arg3[%c0_3, %c0_4, %c0_5] : memref<1x1x32xf32, #tpu.memory_space<vmem>>, vector<1x1x32xf32>
    %6 = vector.shape_cast %5 : vector<1x1x32xf32> to vector<1x32xf32>
    %c0_6 = arith.constant 0 : index
    %c0_7 = arith.constant 0 : index
    %c0_8 = arith.constant 0 : index
    %7 = vector.load %arg5[%c0_6, %c0_7, %c0_8] : memref<1x8x128xf32, #tpu.memory_space<vmem>>, vector<1x8x128xf32>
    %8 = vector.shape_cast %7 : vector<1x8x128xf32> to vector<8x128xf32>
    %c0_9 = arith.constant 0 : index
    %c0_10 = arith.constant 0 : index
    %9 = vector.load %arg7[%c0_9, %c0_10] : memref<8x32xf32, #tpu.memory_space<vmem>>, vector<8x32xf32>
    %10 = vector.extract_strided_slice %9 {offsets = [0, 0], sizes = [1, 32], strides = [1, 1]} : vector<8x32xf32> to vector<1x32xf32>
    %11 = vector.extract_strided_slice %9 {offsets = [1, 0], sizes = [1, 32], strides = [1, 1]} : vector<8x32xf32> to vector<1x32xf32>
    %12 = vector.extract_strided_slice %9 {offsets = [2, 0], sizes = [1, 32], strides = [1, 1]} : vector<8x32xf32> to vector<1x32xf32>
    %c0_11 = arith.constant 0 : index
    %c0_12 = arith.constant 0 : index
    %13 = vector.load %arg11[%c0_11, %c0_12] : memref<1x768xf32, #tpu.memory_space<vmem>>, vector<1x384xf32>
    %c0_13 = arith.constant 0 : index
    %c384 = arith.constant 384 : index
    %14 = vector.load %arg11[%c0_13, %c384] : memref<1x768xf32, #tpu.memory_space<vmem>>, vector<1x128xf32>
    %c0_14 = arith.constant 0 : index
    %c512 = arith.constant 512 : index
    %15 = vector.load %arg11[%c0_14, %c512] : memref<1x768xf32, #tpu.memory_space<vmem>>, vector<1x256xf32>
    %c0_15 = arith.constant 0 : index
    %c0_16 = arith.constant 0 : index
    %16 = vector.load %arg6[%c0_15, %c0_16] : memref<24x32xf32, #tpu.memory_space<vmem>>, vector<24x32xf32>
    %cst = arith.constant dense<0.000000e+00> : vector<8x32xf32>
    %17 = tpu.matmul %4, %16, %cst {dimension_numbers = #tpu.dot_dimension_numbers<[1], [0], [0], [1], [0, 0, 1, 1], [], []>} : vector<8x24xf32>, vector<24x32xf32>, vector<8x32xf32> -> vector<8x32xf32>
    %18 = vector.broadcast %10 : vector<1x32xf32> to vector<8x32xf32>
    %19 = arith.addf %17, %18 : vector<8x32xf32>
    %cst_17 = arith.constant dense<0.000000e+00> : vector<8xf32>
    %20 = vector.multi_reduction <add>, %19, %cst_17 [1] : vector<8x32xf32> to vector<8xf32>
    %21 = vector.shape_cast %20 : vector<8xf32> to vector<8x1xf32>
    %cst_18 = arith.constant 3.200000e+01 : f32
    %22 = vector.broadcast %cst_18 : f32 to vector<8x1xf32>
    %23 = arith.divf %21, %22 : vector<8x1xf32>
    %24 = arith.mulf %19, %19 : vector<8x32xf32>
    %cst_19 = arith.constant dense<0.000000e+00> : vector<8xf32>
    %25 = vector.multi_reduction <add>, %24, %cst_19 [1] : vector<8x32xf32> to vector<8xf32>
    %26 = vector.shape_cast %25 : vector<8xf32> to vector<8x1xf32>
    %cst_20 = arith.constant 3.200000e+01 : f32
    %27 = vector.broadcast %cst_20 : f32 to vector<8x1xf32>
    %28 = arith.divf %26, %27 : vector<8x1xf32>
    %29 = vector.broadcast %23 : vector<8x1xf32> to vector<8x32xf32>
    %30 = arith.subf %19, %29 : vector<8x32xf32>
    %31 = arith.mulf %23, %23 : vector<8x1xf32>
    %32 = arith.subf %28, %31 : vector<8x1xf32>
    %cst_21 = arith.constant 9.99999974E-6 : f32
    %33 = vector.broadcast %cst_21 : f32 to vector<8x1xf32>
    %34 = arith.addf %32, %33 : vector<8x1xf32>
    %35 = math.rsqrt %34 : vector<8x1xf32>
    %36 = vector.broadcast %35 : vector<8x1xf32> to vector<8x32xf32>
    %37 = arith.mulf %30, %36 : vector<8x32xf32>
    %38 = vector.broadcast %11 : vector<1x32xf32> to vector<8x32xf32>
    %39 = arith.mulf %37, %38 : vector<8x32xf32>
    %40 = vector.broadcast %12 : vector<1x32xf32> to vector<8x32xf32>
    %41 = arith.addf %39, %40 : vector<8x32xf32>
    %cst_22 = arith.constant 0.000000e+00 : f32
    %42 = vector.broadcast %cst_22 : f32 to vector<8x32xf32>
    %43 = arith.cmpf ogt, %41, %42 : vector<8x32xf32>
    %cst_23 = arith.constant 2.000000e-01 : f32
    %44 = vector.broadcast %cst_23 : f32 to vector<8x32xf32>
    %45 = arith.mulf %44, %41 : vector<8x32xf32>
    %46 = arith.select %43, %41, %45 : vector<8x32xi1>, vector<8x32xf32>
    %47 = vector.broadcast %6 : vector<1x32xf32> to vector<8x32xf32>
    %48 = arith.addf %46, %47 : vector<8x32xf32>
    %c0_24 = arith.constant 0 : index
    %c0_25 = arith.constant 0 : index
    %49 = vector.load %arg14[%c0_24, %c0_25] : memref<8x128xf32, #tpu.memory_space<vmem>>, vector<8x128xf32>
    %c0_26 = arith.constant 0 : index
    %c0_27 = arith.constant 0 : index
    %50 = vector.load %arg8[%c0_26, %c0_27] : memref<32x384xf32, #tpu.memory_space<vmem>>, vector<32x384xf32>
    %cst_28 = arith.constant dense<0.000000e+00> : vector<8x384xf32>
    %51 = tpu.matmul %48, %50, %cst_28 {dimension_numbers = #tpu.dot_dimension_numbers<[1], [0], [0], [1], [0, 0, 1, 1], [], []>} : vector<8x32xf32>, vector<32x384xf32>, vector<8x384xf32> -> vector<8x384xf32>
    %52 = vector.broadcast %13 : vector<1x384xf32> to vector<8x384xf32>
    %53 = arith.addf %51, %52 : vector<8x384xf32>
    %c0_29 = arith.constant 0 : index
    %c0_30 = arith.constant 0 : index
    %54 = vector.load %arg9[%c0_29, %c0_30] : memref<128x384xf32, #tpu.memory_space<vmem>>, vector<128x384xf32>
    %cst_31 = arith.constant dense<0.000000e+00> : vector<8x384xf32>
    %55 = tpu.matmul %49, %54, %cst_31 {dimension_numbers = #tpu.dot_dimension_numbers<[1], [0], [0], [1], [0, 0, 1, 1], [], []>} : vector<8x128xf32>, vector<128x384xf32>, vector<8x384xf32> -> vector<8x384xf32>
    %56 = vector.extract_strided_slice %53 {offsets = [0, 0], sizes = [8, 256], strides = [1, 1]} : vector<8x384xf32> to vector<8x256xf32>
    %57 = vector.extract_strided_slice %55 {offsets = [0, 0], sizes = [8, 256], strides = [1, 1]} : vector<8x384xf32> to vector<8x256xf32>
    %58 = arith.addf %56, %57 : vector<8x256xf32>
    %59 = arith.negf %58 : vector<8x256xf32>
    %60 = math.exp %59 : vector<8x256xf32>
    %cst_32 = arith.constant 1.000000e+00 : f32
    %61 = vector.broadcast %cst_32 : f32 to vector<8x256xf32>
    %62 = arith.addf %61, %60 : vector<8x256xf32>
    %63 = arith.divf %61, %62 : vector<8x256xf32>
    %64 = vector.extract_strided_slice %63 {offsets = [0, 0], sizes = [8, 128], strides = [1, 1]} : vector<8x256xf32> to vector<8x128xf32>
    %65 = vector.extract_strided_slice %63 {offsets = [0, 128], sizes = [8, 128], strides = [1, 1]} : vector<8x256xf32> to vector<8x128xf32>
    %66 = vector.extract_strided_slice %53 {offsets = [0, 256], sizes = [8, 128], strides = [1, 1]} : vector<8x384xf32> to vector<8x128xf32>
    %67 = vector.extract_strided_slice %55 {offsets = [0, 256], sizes = [8, 128], strides = [1, 1]} : vector<8x384xf32> to vector<8x128xf32>
    %68 = vector.broadcast %14 : vector<1x128xf32> to vector<8x128xf32>
    %69 = arith.addf %67, %68 : vector<8x128xf32>
    %70 = arith.mulf %64, %69 : vector<8x128xf32>
    %71 = arith.addf %66, %70 : vector<8x128xf32>
    %72 = math.tanh %71 : vector<8x128xf32>
    %cst_33 = arith.constant 1.000000e+00 : f32
    %73 = vector.broadcast %cst_33 : f32 to vector<8x128xf32>
    %74 = arith.subf %73, %65 : vector<8x128xf32>
    %75 = arith.mulf %74, %72 : vector<8x128xf32>
    %76 = arith.mulf %65, %49 : vector<8x128xf32>
    %77 = arith.addf %75, %76 : vector<8x128xf32>
    %c0_34 = arith.constant 0 : index
    %c0_35 = arith.constant 0 : index
    %78 = vector.load %arg14[%c0_34, %c0_35] : memref<8x128xf32, #tpu.memory_space<vmem>>, vector<8x128xf32>
    tpu.vector_store %arg14[%c0_34, %c0_35], %77 {strides = array<i32>} : memref<8x128xf32, #tpu.memory_space<vmem>>, vector<8x128xf32>,
    %c0_36 = arith.constant 0 : index
    %c0_37 = arith.constant 0 : index
    %79 = vector.load %arg10[%c0_36, %c0_37] : memref<128x256xf32, #tpu.memory_space<vmem>>, vector<128x256xf32>
    %cst_38 = arith.constant dense<0.000000e+00> : vector<8x256xf32>
    %80 = tpu.matmul %77, %79, %cst_38 {dimension_numbers = #tpu.dot_dimension_numbers<[1], [0], [0], [1], [0, 0, 1, 1], [], []>} : vector<8x128xf32>, vector<128x256xf32>, vector<8x256xf32> -> vector<8x256xf32>
    %81 = vector.broadcast %15 : vector<1x256xf32> to vector<8x256xf32>
    %82 = arith.addf %80, %81 : vector<8x256xf32>
    %83 = vector.extract_strided_slice %82 {offsets = [0, 0], sizes = [8, 128], strides = [1, 1]} : vector<8x256xf32> to vector<8x128xf32>
    %84 = vector.extract_strided_slice %82 {offsets = [0, 128], sizes = [8, 128], strides = [1, 1]} : vector<8x256xf32> to vector<8x128xf32>
    %cst_39 = arith.constant 5.000000e-01 : f32
    %85 = vector.broadcast %cst_39 : f32 to vector<8x128xf32>
    %86 = arith.mulf %85, %84 : vector<8x128xf32>
    %87 = math.exp %86 : vector<8x128xf32>
    %88 = arith.mulf %8, %87 : vector<8x128xf32>
    %89 = arith.addf %88, %83 : vector<8x128xf32>
    %90 = tpu.concatenate %89, %83, %84 in 1 : vector<8x128xf32>, vector<8x128xf32>, vector<8x128xf32> -> vector<8x384xf32>
    %c0_40 = arith.constant 0 : index
    %c0_41 = arith.constant 0 : index
    %c0_42 = arith.constant 0 : index
    %91 = vector.load %arg12[%c0_40, %c0_41, %c0_42] : memref<1x8x384xf32, #tpu.memory_space<vmem>>, vector<1x8x384xf32>
    %92 = vector.shape_cast %91 : vector<1x8x384xf32> to vector<8x384xf32>
    %93 = vector.shape_cast %90 : vector<8x384xf32> to vector<1x8x384xf32>
    tpu.vector_store %arg12[%c0_40, %c0_41, %c0_42], %93 {strides = array<i32>} : memref<1x8x384xf32, #tpu.memory_space<vmem>>, vector<1x8x384xf32>,
    %c5_i32 = arith.constant 5 : i32
    %94 = arith.cmpi eq, %arg0, %c5_i32 : i32
    %95 = arith.extui %94 : i1 to i32
    %c0_i32_43 = arith.constant 0 : i32
    %96 = arith.cmpi ne, %95, %c0_i32_43 : i32
    scf.if %96 {
      %c0_44 = arith.constant 0 : index
      %c0_45 = arith.constant 0 : index
      %97 = vector.load %arg13[%c0_44, %c0_45] : memref<8x128xf32, #tpu.memory_space<vmem>>, vector<8x128xf32>
      tpu.vector_store %arg13[%c0_44, %c0_45], %77 {strides = array<i32>} : memref<8x128xf32, #tpu.memory_space<vmem>>, vector<8x128xf32>,
    } else {
    }
    return
  }
  func.func @transform_0(%arg0: i32, %arg1: memref<6xi32, #tpu.memory_space<smem>>) -> (i32, i32, i32) {
    %c0_i32 = arith.constant 0 : i32
    %c0_i32_0 = arith.constant 0 : i32
    %c0_i32_1 = arith.constant 0 : i32
    return %arg0, %c0_i32, %c0_i32_0 : i32, i32, i32
  }
  func.func @transform_1(%arg0: i32, %arg1: memref<6xi32, #tpu.memory_space<smem>>) -> (i32, i32, i32) {
    %0 = arith.index_cast %arg0 : i32 to index
    %1 = memref.load %arg1[%0] : memref<6xi32, #tpu.memory_space<smem>>
    %c0_i32 = arith.constant 0 : i32
    %c0_i32_0 = arith.constant 0 : i32
    %c0_i32_1 = arith.constant 0 : i32
    return %1, %c0_i32, %c0_i32_0 : i32, i32, i32
  }
  func.func @transform_2(%arg0: i32, %arg1: memref<6xi32, #tpu.memory_space<smem>>) -> (i32, i32) {
    %c0_i32 = arith.constant 0 : i32
    %c0_i32_0 = arith.constant 0 : i32
    %c0_i32_1 = arith.constant 0 : i32
    return %c0_i32, %c0_i32_0 : i32, i32
  }
  func.func @transform_3(%arg0: i32, %arg1: memref<6xi32, #tpu.memory_space<smem>>) -> (i32, i32, i32) {
    %c0_i32 = arith.constant 0 : i32
    %c0_i32_0 = arith.constant 0 : i32
    %c0_i32_1 = arith.constant 0 : i32
    return %arg0, %c0_i32, %c0_i32_0 : i32, i32, i32
  }
  func.func @transform_4(%arg0: i32, %arg1: memref<6xi32, #tpu.memory_space<smem>>) -> (i32, i32) {
    %c0_i32 = arith.constant 0 : i32
    %c0_i32_0 = arith.constant 0 : i32
    %c0_i32_1 = arith.constant 0 : i32
    return %c0_i32, %c0_i32_0 : i32, i32
  }
  func.func @transform_5(%arg0: i32, %arg1: memref<6xi32, #tpu.memory_space<smem>>) -> (i32, i32) {
    %c0_i32 = arith.constant 0 : i32
    %c0_i32_0 = arith.constant 0 : i32
    %c0_i32_1 = arith.constant 0 : i32
    return %c0_i32, %c0_i32_0 : i32, i32
  }
  func.func @transform_6(%arg0: i32, %arg1: memref<6xi32, #tpu.memory_space<smem>>) -> (i32, i32) {
    %c0_i32 = arith.constant 0 : i32
    %c0_i32_0 = arith.constant 0 : i32
    %c0_i32_1 = arith.constant 0 : i32
    return %c0_i32, %c0_i32_0 : i32, i32
  }
  func.func @transform_7(%arg0: i32, %arg1: memref<6xi32, #tpu.memory_space<smem>>) -> (i32, i32) {
    %c0_i32 = arith.constant 0 : i32
    %c0_i32_0 = arith.constant 0 : i32
    %c0_i32_1 = arith.constant 0 : i32
    return %c0_i32, %c0_i32_0 : i32, i32
  }
  func.func @transform_8(%arg0: i32, %arg1: memref<6xi32, #tpu.memory_space<smem>>) -> (i32, i32) {
    %c0_i32 = arith.constant 0 : i32
    %c0_i32_0 = arith.constant 0 : i32
    %c0_i32_1 = arith.constant 0 : i32
    return %c0_i32, %c0_i32_0 : i32, i32
  }
  func.func @transform_9(%arg0: i32, %arg1: memref<6xi32, #tpu.memory_space<smem>>) -> (i32, i32) {
    %c0_i32 = arith.constant 0 : i32
    %c0_i32_0 = arith.constant 0 : i32
    %c0_i32_1 = arith.constant 0 : i32
    return %c0_i32, %c0_i32_0 : i32, i32
  }
  func.func @transform_10(%arg0: i32, %arg1: memref<6xi32, #tpu.memory_space<smem>>) -> (i32, i32, i32) {
    %c0_i32 = arith.constant 0 : i32
    %c0_i32_0 = arith.constant 0 : i32
    %c0_i32_1 = arith.constant 0 : i32
    return %arg0, %c0_i32, %c0_i32_0 : i32, i32, i32
  }
  func.func @transform_11(%arg0: i32, %arg1: memref<6xi32, #tpu.memory_space<smem>>) -> (i32, i32) {
    %c0_i32 = arith.constant 0 : i32
    %c0_i32_0 = arith.constant 0 : i32
    %c0_i32_1 = arith.constant 0 : i32
    return %c0_i32, %c0_i32_0 : i32, i32
  }
}

</mosaic_0001>

<bundles_post_ra>
// kernel: tpu_custom_call.1
= control target key start
LH: loop header
LB: loop body
LE: loop exit
PB: predicated region body
PF: predicated region fallthrough
CT: control target
= control target key end

     0   :  { %s1602_s24 = smov [#allocation4]   ;;  %s2098_s0 = inlined_call_operand.vmem [shape: s32[6], index: 0, kind: input, shape index: {}]   ;;  %s2099_s1 = inlined_call_operand.hbm [shape: f32[6,8,24], index: 1, kind: input, shape index: {}]   ;;  %s2100_s2 = inlined_call_operand.vmem [shape: f32[300,1,32], index: 2, kind: input, shape index: {}]   ;;  %s2101_s3 = inlined_call_operand.vmem [shape: f32[8,128], index: 3, kind: input, shape index: {}]   ;;  %s2102_s4 = inlined_call_operand.hbm [shape: f32[6,8,128], index: 4, kind: input, shape index: {}]   ;;  %s2103_s5 = inlined_call_operand.hbm [shape: f32[24,32], index: 5, kind: input, shape index: {}]   ;;  %s2104_s6 = inlined_call_operand.vmem [shape: f32[8,32], index: 6, kind: input, shape index: {}]   ;;  %s2105_s7 = inlined_call_operand.hbm [shape: f32[32,384], index: 7, kind: input, shape index: {}]   ;;  %s2106_s8 = inlined_call_operand.vmem [shape: f32[128,384], index: 8, kind: input, shape index: {}]   ;;  %s2107_s9 = inlined_call_operand.hbm [shape: f32[128,256], index: 9, kind: input, shape index: {}]   ;;  %s2108_s10 = inlined_call_operand.hbm [shape: f32[1,768], index: 10, kind: input, shape index: {}]   ;;  %s2109_s11 = inlined_call_operand.hbm [shape: f32[6,8,384], index: 11, kind: output, shape index: {0}]   ;;  %s2110_s12 = inlined_call_operand.hbm [shape: f32[8,128], index: 12, kind: output, shape index: {1}]  }
   0x1   :  { %2118 = sst [smem:[#allocation33_spill]] %s2103_s5  ;;  %s19_s23 = sshll.u32 %s2098_s0, 4  ;;  %s20_s23 = int_to_ptr.vmem [resolvable:$true] %s19_s23 }
   0x2   :  { %2119 = sst [smem:[#allocation34_spill]] %s2105_s7 }
   0x3   :  { %2120 = sst [smem:[#allocation35_spill]] %s2107_s9 }
   0x4   :  { %2121 = sst [smem:[#allocation36_spill]] %s2108_s10 }
   0x5   :  { %22 = dma.vmem_to_smem %s20_s23, 16, %s1602_s24, [#allocation3] }
   0x6   :  { %1556 = dma.done.wait [#allocation3], 16 }
   0x7   :  { %1557 = vsyncadd [#allocation3], 4294967280 }
   0x8   :  { %25 = sfence }
   0x9   :  { %26 = vsyncpa [#allocation6], 0 }
   0xa   :  { %28 = vsyncpa [#allocation6 + $0x1], 0 }
   0xb   :  { %29 = vsyncpa [#allocation9], 0 }
   0xc   :  { %31 = vsyncpa [#allocation9 + $0x1], 0 }
   0xd   :  { %32 = vsyncpa [#allocation12], 0 }
   0xe   :  { %33 = vsyncpa [#allocation15], 0 }
   0xf   :  { %34 = vsyncpa [#allocation7], 0 }
  0x10   :  { %36 = vsyncpa [#allocation7 + $0x1], 0 }
  0x11   :  { %37 = vsyncpa [#allocation18], 0  ;;  %s1683_s25 = smov 0   ;;  %s1685_s26 = smov 0  }
  0x12   :  { %s1687_s0 = smov 0   ;;  %s1689_s27 = smov 0  }
  0x13 LB: > { %2122 = sst [smem:[#allocation27_spill]] %s1588_s25  ;;  %s1707_s13 = sadd.s32 4294967295, %s1600_s27   ;;  %s1600_s27 = sphi %s1689_s27, %s2146_s27   ;;  %s1596_s0 = sphi %s1687_s0, %s2148_s0   ;;  %s1592_s26 = sphi %s1685_s26, %s2150_s26   ;;  %s1588_s25 = sphi %s1683_s25, %s2149_s25  }
  0x14   : > { %2123 = sst [smem:[#allocation28_spill]] %s1596_s0  ;;  %p1135_p0 = scmp.ge.s32.totalorder %s1600_s27, 1 }
  0x15   : > { %2124 = sst [smem:[#allocation29_spill]] %s1600_s27  ;;  %p64_p1 = scmp.eq.s32.totalorder %s1707_s13, 0 }
  0x16   : > { %s2125_s5 = sld [smem:[#allocation33_spill]]  ;;  %p322_p2 = scmp.lt.s32.totalorder %s1600_s27, 7 }
  0x17   : > { %s1603_s15 = smov [#allocation10]   ;;  %s2127_s7 = sld [smem:[#allocation34_spill]] }
  0x18   : > { %p1713_p4 = pnand %p1135_p0, %p322_p2  ;;  %s338_s16 = sshll.u32 %s1603_s15, 4  ;;  %s339_s16 = int_to_ptr.vmem [resolvable:$true] %s338_s16 }
  0x19   : > { %s1604_s21 = smov [#allocation11]   ;;  %s1605_s23 = smov 128  }
  0x1a   : > { %p1193_p5 = pneg %p1713_p4  ;;  %s355_s22 = sshll.u32 %s1604_s21, 4  ;;  %s356_s22 = int_to_ptr.vmem [resolvable:$true] %s355_s22 }
  0x1b   : > { %s1606_s24 = smov 8   ;;  %s1607_s28 = smov 384  }
  0x1c   : > { %s336_s30 = sshll.u32 %s2125_s5, 4  ;;  %p1724_p6 = pnand %p1193_p5, %p64_p1  ;;  %s337_s30 = int_to_ptr.hbm [resolvable:$true] %s336_s30 }
  0x1d   : > { %s353_s19 = sshll.u32 %s2127_s7, 4  ;;  %s1608_s29 = smov 24   ;;  %s354_s19 = int_to_ptr.hbm [resolvable:$true] %s353_s19 }
  0x1e   : > { %1196 = dma.hbm_to_vmem [thread:$0]  (!%p1724_p6), %s337_s30, 384, %s339_s16, [#allocation9], %s1605_s23, %s1605_s23, %s1606_s24  }
  0x1f   : > { %1199 = dma.hbm_to_vmem [thread:$0]  (!%p1724_p6), %s354_s19, 1536, %s356_s22, [#allocation12], %s1607_s28, %s1607_s28, %s1608_s29  }
  0x20   : > { %s2129_s9 = sld [smem:[#allocation35_spill]]  ;;  %s1609_s21 = smov [#allocation13]  }
  0x21   : > { %s372_s5 = sshll.u32 %s1609_s21, 4  ;;  %s2130_s10 = sld [smem:[#allocation36_spill]]  ;;  %s373_s5 = int_to_ptr.vmem [resolvable:$true] %s372_s5 }
  0x22   : > { %s1610_s19 = smov 256   ;;  %s1611_s22 = smov 16  }
  0x23   : > { %s1612_s24 = smov [#allocation14]   ;;  %s1134_s29 = sadd.s32 4294967294, %s1600_s27  }
  0x24   : > { %s387_s28 = sshll.u32 %s1612_s24, 4  ;;  %s1744_s15 = sadd.s32 1, %s1600_s27   ;;  %s388_s28 = int_to_ptr.vmem [resolvable:$true] %s387_s28 }
  0x25   : > { %2131 = sst [smem:[#allocation30_spill]] %s1744_s15  ;;  %s47_s17 = ssub.s32 %s1600_s27, %s1744_s15 }
  0x26   : > { %s370_s18 = sshll.u32 %s2129_s9, 4  ;;  %s50_s21 = sadd.s32 1, %s1596_s0  ;;  %s371_s18 = int_to_ptr.hbm [resolvable:$true] %s370_s18 }
  0x27   : > { %s385_s23 = sshll.u32 %s2130_s10, 4  ;;  %p48_p7 = scmp.eq.s32.totalorder %s47_s17, 0  ;;  %s386_s23 = int_to_ptr.hbm [resolvable:$true] %s385_s23 }
  0x28   : > { %1202 = dma.hbm_to_vmem [thread:$0]  (!%p1724_p6), %s371_s18, 4096, %s373_s5, [#allocation12], %s1610_s19, %s1610_s19, %s1611_s22  }
  0x29   : > { %1205 = dma.hbm_to_vmem [thread:$0]  (!%p1724_p6), %s386_s23, 96, %s388_s28, [#allocation15]  }
  0x2a   : > { %p57_p8 = scmp.ne.s32.totalorder %s1596_s0, %s1592_s26  ;;  %p58_p9 = scmp.eq.s32.totalorder %s1600_s27, 0 }
  0x2b   : > { %p63_p10 = scmp.ne.s32.totalorder %s1592_s26, %s1588_s25  ;;  %p2115_p13 = scmp.eq.s32.totalorder %s1707_s13, 5 }
  0x2c   : > { %s1755_s5 = scalar_select %p48_p7, %s1596_s0, %s50_s21  }
  0x2d   : > { %p1757_p11 = por %p58_p9, %p57_p8  ;;  %p1763_p12 = por %p64_p1, %p63_p10 }
  0x2e   : > { %2132 = sst [smem:[#allocation31_spill]] %s1755_s5  ;;  %p294_p0 = scmp.eq.s32.totalorder %s1134_s29, 5 }
  0x2f   : > { %p1221_p2 = scmp.lt.s32.totalorder %s1600_s27, 6  ;;  %s398_s30 = sand.u32 1, %s1596_s0  }
  0x30   : > { %p1772_p5 = por %p2115_p13, %p57_p8  ;;  %p1776_p6 = por %p294_p0, %p63_p10 }
  0x31   : > { %s1780_s19 = sshll.u32 %s398_s30, 3  ;;  %s1142_s22 = sshll.u32 %s1600_s27, 3 }
  0x32   : > { %s2136_s23 = scalar_select %p1776_p6, 1, 0 }
  0x33   : > { %s406_s17 = scalar_lea.hbm %s2099_s1, %s1142_s22  ;;  %s402_s29 = scalar_lea.vmem [#allocation5], %s1780_s19 }
  0x34   : > { %2137 = sst [smem:[#allocation32_spill]] %s2136_s23  ;;  %s410_s21 = sshll.u32 %s402_s29, 4  ;;  %s411_s21 = int_to_ptr.vmem [resolvable:$true] %s410_s21 }
  0x35   : > { %s408_s7 = sshll.u32 %s406_s17, 4  ;;  %p1789_p7 = pnand %p1221_p2, %p1757_p11  ;;  %s409_s7 = int_to_ptr.hbm [resolvable:$true] %s408_s7 }
  0x36   : > { %s433_s0 = scalar_lea.hbm %s2102_s4, %s1142_s22  ;;  %s425_s15 = sand.u32 1, %s1600_s27  }
  0x37   : > { %s399_s23 = scalar_lea.sflag [#allocation6], %s398_s30  ;;  %s1424_s24 = sshra.s32 %s409_s7, 4  ;;  %s1425_s24 = int_to_ptr.hbm [resolvable:$true] %s1424_s24 }
  0x38   : > { %s1426_s28 = scalar_lea.hbm %s1425_s24, 8  ;;  %p1428_p9 = pneg %p1789_p7 }
  0x39   : > { %p1427_p8 = scmp.ne.s32.totalorder %s1425_s24, %s1426_s28  ;;  %s1431_s29 = scalar_lea.hbm %s2099_s1, 48 }
  0x3a   : > { %p1432_p0 = scmp.lt.s32.totalorder %s1425_s24, %s2099_s1  ;;  %p1433_p2 = scmp.lt.s32.totalorder %s1431_s29, %s1426_s28 }
  0x3b   : > { %p1429_p10 = pnand %p1428_p9, %p1427_p8 }
  0x3c   : > { %p1434_p13 = por %p1433_p2, %p1432_p0 }
  0x3d   : > { %p1430_p11 = pneg %p1429_p10 }
  0x3f   : > { %p1435_p3 = pnand %p1434_p13, %p1430_p11 }
  0x41   : > { %1438 = shalt.err (!%p1435_p3)
}
  0x42   : > { %1209 = dma.hbm_to_vmem [thread:$0]  (!%p1789_p7), %s409_s7, 128, %s411_s21, %s399_s23  }
  0x43   : > { %s435_s30 = sshll.u32 %s433_s0, 4  ;;  %s429_s22 = scalar_lea.vmem [#allocation8], %s1780_s19  ;;  %s436_s30 = int_to_ptr.hbm [resolvable:$true] %s435_s30 }
  0x44   : > { %s437_s25 = sshll.u32 %s429_s22, 4  ;;  %s426_s18 = scalar_lea.sflag [#allocation9], %s425_s15  ;;  %s438_s25 = int_to_ptr.vmem [resolvable:$true] %s437_s25 }
  0x45   : > { %s1454_s17 = sshra.s32 %s436_s30, 4  ;;  %s1461_s29 = scalar_lea.hbm %s2102_s4, 48  ;;  %s1455_s17 = int_to_ptr.hbm [resolvable:$true] %s1454_s17 }
  0x46   : > { %s1456_s27 = scalar_lea.hbm %s1455_s17, 8  ;;  %p1462_p3 = scmp.lt.s32.totalorder %s1455_s17, %s2102_s4 }
  0x47   : > { %p1457_p8 = scmp.ne.s32.totalorder %s1455_s17, %s1456_s27  ;;  %p1463_p11 = scmp.lt.s32.totalorder %s1461_s29, %s1456_s27 }
  0x49   : > { %p1459_p10 = pnand %p1457_p8, %p1428_p9  ;;  %p1464_p0 = por %p1463_p11, %p1462_p3 }
  0x4b   : > { %p1460_p13 = pneg %p1459_p10 }
  0x4d   : > { %p1465_p2 = pnand %p1464_p0, %p1460_p13 }
  0x4f   : > { %1468 = shalt.err (!%p1465_p2)
}
  0x50   : > { %1212 = dma.hbm_to_vmem [thread:$0]  (!%p1789_p7), %s436_s30, 128, %s438_s25, %s426_s18  }
  0x51   : > { %446 = sbr.rel (%p1713_p4) target bundleno = 743 (0x2e7), region = 60  ;;  %s1825_s0 = sand.u32 (!%p1713_p4), 1, %s1592_s26  }
  0x52   : > { %s1146_s15 = sshll.u32 (!%p1713_p4), %s1825_s0, 3  ;;  %s449_s23 = scalar_lea.sflag (!%p1713_p4), [#allocation6], %s1825_s0 }
  0x53   : > { %s452_s19 = scalar_lea.vmem (!%p1713_p4), [#allocation5], %s1146_s15 }
  0x56   : > { %1559 = dma.done.wait (%p1763_p12), %s449_s23, 128  }
  0x57   : > { %1561 = vsyncadd (%p1763_p12), %s449_s23, 4294967168  ;;  %s458_s9 = sand.u32 1, %s1707_s13   ;;  %s1834_s27 = scalar_lea.vmem [#allocation8], %s1146_s15 }
  0x58   : > { %s459_s25 = scalar_lea.sflag [#allocation9], %s458_s9 }
  0x59   : > { %1563 = dma.done.wait (%p1763_p12), %s459_s25, 128  }
  0x5a   : > { %1565 = vsyncadd (%p1763_p12), %s459_s25, 4294967168 }
  0x5b   : > { %1567 = dma.done.wait (%p64_p1), [#allocation9], 384  }
  0x5c   : > { %1569 = vsyncadd (%p64_p1), [#allocation9], 4294966912 }
  0x5d   : > { %1571 = dma.done.wait (%p64_p1), [#allocation12], 5632  }
  0x5e   : > { %1573 = vsyncadd (%p64_p1), [#allocation12], 4294961664 }
  0x5f   : > { %1575 = dma.done.wait (%p64_p1), [#allocation15], 96  }
  0x60   : > { %1577 = vsyncadd (%p64_p1), [#allocation15], 4294967200  ;;  %s1165_s14 = smul.u32 24, %s1825_s0  ;;  %s531_s20 = sld [smem:[#allocation4 + %s1707_s13]] }
  0x61   : > { %p2139_p12 = scmp.ne.s32.totalorder %s1707_s13, 0 }
  0x62   : > { %s1860_s22 = scalar_lea.vmem [#allocation16], %s1165_s14 }
  0x65   : > { %539 = sbr.rel (%p2139_p12) target bundleno = 108 (0x6c), region = 88 }
  0x66   : > { %p532_p4 = scmp.lt.s32.totalorder %s531_s20, 299 }
  0x68   : > { %s2152_s20 = smov (!%p532_p4, %s531_s20), 299 }
  0x69   : > { %s534_s30 = scalar_lea.vmem %s2100_s2, %s2152_s20 }
  0x6a   : > { %v540_v0 = vld [vmem:[%s2101_s3] sm:$0xff] }
  0x6b   : > { %541 = vst [vmem:[#allocation2] sm:$0xff] %v540_v0 }
  0x6c PF: > { %v551_v1 = vld [vmem:[#allocation10 + $0x10] sm:$0xff]  ;;  %v550_v2 = vld [vmem:[#allocation10 + $0x8] sm:$0xff]  ;;  %v549_v3 = vld [vmem:[#allocation10] sm:$0xff]  ;;  %vm553_vm0 = vcmask 195584   ;;  %vm577_vm1 = vcmask 261120   ;;  %v1613_v12 = vmov 32.0  }
  0x6d   : > { %570 = vmatpush.msra.mxu1 %v551_v1  ;;  %v542_v4 = vld [vmem:[%s452_s19] sm:$0xff]  ;;  %v1870_v5 = vld [vmem:[%s2104_s6] sm:$0xff]  ;;  %1276 = vrcp.f32 %v1613_v12  ;;  %v624_v18 = vld [vmem:[#allocation11 + $0x18] sm:$0xff]  ;;  %p1159_p1 = scmp.ne.s32.totalorder %s1707_s13, 5 }
  0x6e   : > { %v552_v6 = vperm.slane %v1870_v5, 0  ;;  %v630_v13 = vld [vmem:[#allocation11 + $0x48] sm:$0xff]  ;;  %v627_v16 = vld [vmem:[#allocation11 + $0x30] sm:$0xff]  ;;  %v742_v20 = vld [vmem:[%s2106_s8 + $0x138] sm:$0xff] }
  0x6f   : > { %571 = vmatpush.msra.mxu1 %v550_v2  ;;  %v748_v14 = vld [vmem:[%s2106_s8 + $0x168] sm:$0xff]  ;;  %v745_v17 = vld [vmem:[%s2106_s8 + $0x150] sm:$0xff]  ;;  %v621_v21 = vld [vmem:[#allocation11] sm:$0xff] }
  0x70   : > { %751 = vmatpush.msra.mxu0 %v748_v14  ;;  %v739_v22 = vld [vmem:[%s2106_s8 + $0x120] sm:$0xff]  ;;  %v749_v23 = vld [vmem:[%s2106_s8 + $0x170] sm:$0xff]  ;;  %v736_v25 = vld [vmem:[%s2106_s8 + $0x108] sm:$0xff] }
  0x71   : > { %572 = vmatpush.msra.mxu1 %v549_v3  ;;  %v746_v26 = vld [vmem:[%s2106_s8 + $0x158] sm:$0xff]  ;;  %v733_v27 = vld [vmem:[%s2106_s8 + $0xf0] sm:$0xff]  ;;  %v743_v28 = vld [vmem:[%s2106_s8 + $0x140] sm:$0xff] }
  0x72   : > { %1153 = vmatmul.msk.f32.vlgmr.msra.gmra.mxu1 %vm553_vm0, %v542_v4  ;;  %752 = vmatpush.msra.mxu0 %v745_v17  ;;  %v730_v30 = vld [vmem:[%s2106_s8 + $0xd8] sm:$0xff]  ;;  %v740_v31 = vld [vmem:[%s2106_s8 + $0x128] sm:$0xff]  ;;  %v727_v32 = vld [vmem:[%s2106_s8 + $0xc0] sm:$0xff] }
  0x73   : > { %655 = vmatpush.msrb.mxu1 %v630_v13  ;;  %v1277_v15 = vpop.eup %1276  ;;  %v737_v33 = vld [vmem:[%s2106_s8 + $0x110] sm:$0xff]  ;;  %v724_v36 = vld [vmem:[%s2106_s8 + $0xa8] sm:$0xff]  ;;  %v734_v37 = vld [vmem:[%s2106_s8 + $0xf8] sm:$0xff] }
  0x74   : > { %v582_v19 = vmul.f32 32.0, %v1277_v15  ;;  %753 = vmatpush.msra.mxu0 %v742_v20  ;;  %v631_v34 = vld [vmem:[#allocation11 + $0x50] sm:$0xff]  ;;  %vm586_vm2 = vweird.f32 %v1277_v15  ;;  %v628_v38 = vld [vmem:[#allocation11 + $0x38] sm:$0xff]  ;;  %v731_v41 = vld [vmem:[%s2106_s8 + $0xe0] sm:$0xff] }
  0x75   : > { %656 = vmatpush.msrb.mxu1 %v627_v16  ;;  %675 = vmatpush.msra.mxu2 %v631_v34  ;;  %v721_v40 = vld [vmem:[%s2106_s8 + $0x90] sm:$0xff]  ;;  %v625_v42 = vld [vmem:[#allocation11 + $0x20] sm:$0xff]  ;;  %v718_v44 = vld [vmem:[%s2106_s8 + $0x78] sm:$0xff] }
  0x76   : > { %754 = vmatpush.msra.mxu0 %v739_v22  ;;  %v583_v24 = vsub.f32 1.0, %v582_v19  ;;  %v728_v45 = vld [vmem:[%s2106_s8 + $0xc8] sm:$0xff]  ;;  %v632_v47 = vld [vmem:[#allocation11 + $0x58] sm:$0xff]  ;;  %v715_v48 = vld [vmem:[%s2106_s8 + $0x60] sm:$0xff] }
  0x77   : > { %657 = vmatpush.msrb.mxu1 %v624_v18  ;;  %676 = vmatpush.msra.mxu2 %v628_v38  ;;  %v622_v46 = vld [vmem:[#allocation11 + $0x8] sm:$0xff]  ;;  %v725_v49 = vld [vmem:[%s2106_s8 + $0xb0] sm:$0xff]  ;;  %v750_v50 = vld [vmem:[%s2106_s8 + $0x178] sm:$0xff] }
  0x78   : > { %755 = vmatpush.msra.mxu0 %v736_v25  ;;  %v584_v29 = vmul.f32 %v1277_v15, %v583_v24  ;;  %695 = vmatpush.msra.mxu3 %v632_v47  ;;  %v629_v51 = vld [vmem:[#allocation11 + $0x40] sm:$0xff]  ;;  %v712_v53 = vld [vmem:[%s2106_s8 + $0x48] sm:$0xff]  ;;  %v722_v54 = vld [vmem:[%s2106_s8 + $0x98] sm:$0xff] }
  0x79   : > { %658 = vmatpush.msrb.mxu1 %v621_v21  ;;  %677 = vmatpush.msra.mxu2 %v625_v42  ;;  %v747_v55 = vld [vmem:[%s2106_s8 + $0x160] sm:$0xff]  ;;  %v626_v56 = vld [vmem:[#allocation11 + $0x28] sm:$0xff]  ;;  %v709_v57 = vld [vmem:[%s2106_s8 + $0x30] sm:$0xff] }
  0x7a   : > { %756 = vmatpush.msra.mxu0 %v733_v27  ;;  %v585_v35 = vadd.f32 %v1277_v15, %v584_v29  ;;  %696 = vmatpush.msra.mxu3 %v629_v51  ;;  %v719_v58 = vld [vmem:[%s2106_s8 + $0x80] sm:$0xff]  ;;  %v744_v59 = vld [vmem:[%s2106_s8 + $0x148] sm:$0xff]  ;;  %v623_v60 = vld [vmem:[#allocation11 + $0x10] sm:$0xff]  ;;  %v609_v29 = vperm.slane %v1870_v5, 1 }
  0x7b   : > { %771 = vmatpush.msra.mxu1 %v749_v23  ;;  %678 = vmatpush.msra.mxu2 %v622_v46  ;;  %v706_v62 = vld [vmem:[%s2106_s8 + $0x18] sm:$0xff]  ;;  %v716_v63 = vld [vmem:[%s2106_s8 + $0x68] sm:$0xff]  ;;  %v741_v2 = vld [vmem:[%s2106_s8 + $0x130] sm:$0xff] }
  0x7c   : > { %757 = vmatpush.msra.mxu0 %v730_v30  ;;  %v587_v43 = vsel %vm586_vm2, %v1277_v15, %v585_v35  ;;  %697 = vmatpush.msra.mxu3 %v626_v56  ;;  %v735_v12 = vld [vmem:[%s2106_s8 + $0x100] sm:$0xff]  ;;  %v732_v14 = vld [vmem:[%s2106_s8 + $0xe8] sm:$0xff]  ;;  %v729_v16 = vld [vmem:[%s2106_s8 + $0xd0] sm:$0xff] }
  0x7d   : > { %772 = vmatpush.msra.mxu1 %v746_v26  ;;  %791 = vmatpush.msrb.mxu2 %v750_v50  ;;  %v707_v13 = vld [vmem:[%s2106_s8 + $0x20] sm:$0xff]  ;;  %v704_v15 = vld [vmem:[%s2106_s8 + $0x8] sm:$0xff]  ;;  %v726_v17 = vld [vmem:[%s2106_s8 + $0xb8] sm:$0xff] }
  0x7e   : > { %758 = vmatpush.msra.mxu0 %v727_v32  ;;  %698 = vmatpush.msra.mxu3 %v623_v60  ;;  %v723_v20 = vld [vmem:[%s2106_s8 + $0xa0] sm:$0xff]  ;;  %v720_v22 = vld [vmem:[%s2106_s8 + $0x88] sm:$0xff]  ;;  %v717_v24 = vld [vmem:[%s2106_s8 + $0x70] sm:$0xff] }
  0x7f   : > { %773 = vmatpush.msra.mxu1 %v743_v28  ;;  %792 = vmatpush.msrb.mxu2 %v747_v55  ;;  %v714_v26 = vld [vmem:[%s2106_s8 + $0x58] sm:$0xff]  ;;  %v711_v28 = vld [vmem:[%s2106_s8 + $0x40] sm:$0xff]  ;;  %v708_v32 = vld [vmem:[%s2106_s8 + $0x28] sm:$0xff] }
  0x80   : > { %759 = vmatpush.msra.mxu0 %v724_v36  ;;  %v705_v35 = vld [vmem:[%s2106_s8 + $0x10] sm:$0xff]  ;;  %v891_v42 = vld [vmem:[#allocation13 + $0xe0] sm:$0xff]  ;;  %v888_v47 = vld [vmem:[#allocation13 + $0xc8] sm:$0xff] }
  0x81   : > { %774 = vmatpush.msra.mxu1 %v740_v31  ;;  %793 = vmatpush.msrb.mxu2 %v744_v59  ;;  %v887_v46 = vld [vmem:[#allocation13 + $0xc0] sm:$0xff]  ;;  %v882_v55 = vld [vmem:[#allocation13 + $0x98] sm:$0xff] }
  0x82   : > { %760 = vmatpush.msra.mxu0 %v721_v40  ;;  %v2045_v50 = vld [vmem:[#allocation14] sm:$0x7] }
  0x83   : > { %775 = vmatpush.msra.mxu1 %v737_v33  ;;  %794 = vmatpush.msrb.mxu2 %v741_v2  ;;  %v611_v33 = vperm.slane %v1870_v5, 2  ;;  %v893_v5 = vld [vmem:[#allocation13 + $0xf0] sm:$0xff]  ;;  %v883_v51 = vld [vmem:[#allocation13 + $0xa0] sm:$0xff]  ;;  %v876_v2 = vld [vmem:[#allocation13 + $0x68] sm:$0xff] }
  0x84   : > { %761 = vmatpush.msra.mxu0 %v718_v44  ;;  %900 = vmatpush.msrb.mxu3 %v893_v5  ;;  %v889_v44 = vld [vmem:[#allocation13 + $0xd0] sm:$0xff]  ;;  %v879_v56 = vld [vmem:[#allocation13 + $0x80] sm:$0xff] }
  0x85   : > { %776 = vmatpush.msra.mxu1 %v734_v37 }
  0x86   : > { %762 = vmatpush.msra.mxu0 %v715_v48  ;;  %901 = vmatpush.msrb.mxu3 %v891_v42  ;;  %v885_v48 = vld [vmem:[#allocation13 + $0xb0] sm:$0xff] }
  0x87   : > { %777 = vmatpush.msra.mxu1 %v731_v41  ;;  %v894_v41 = vld [vmem:[#allocation13 + $0xf8] sm:$0xff] }
  0x88   : > { %763 = vmatpush.msra.mxu0 %v712_v53  ;;  %902 = vmatpush.msrb.mxu3 %v889_v44  ;;  %v634_v53 = vperm.slane %v2045_v50, 0 }
  0x89   : > { %778 = vmatpush.msra.mxu1 %v728_v45  ;;  %v890_v45 = vld [vmem:[#allocation13 + $0xd8] sm:$0xff] }
  0x8a   : > { %764 = vmatpush.msra.mxu0 %v709_v57  ;;  %903 = vmatpush.msrb.mxu3 %v887_v46  ;;  %v880_v57 = vld [vmem:[#allocation13 + $0x88] sm:$0xff] }
  0x8b   : > { %779 = vmatpush.msra.mxu1 %v725_v49  ;;  %v886_v49 = vld [vmem:[#allocation13 + $0xb8] sm:$0xff] }
  0x8c   : > { %765 = vmatpush.msra.mxu0 %v706_v62  ;;  %904 = vmatpush.msrb.mxu3 %v885_v48  ;;  %v878_v62 = vld [vmem:[#allocation13 + $0x78] sm:$0xff] }
  0x8d   : > { %780 = vmatpush.msra.mxu1 %v722_v54  ;;  %v881_v54 = vld [vmem:[#allocation13 + $0x90] sm:$0xff] }
  0x8e   : > { %905 = vmatpush.msrb.mxu3 %v883_v51 }
  0x8f   : > { %781 = vmatpush.msra.mxu1 %v719_v58 }
  0x90   : > { %906 = vmatpush.msrb.mxu3 %v881_v54 }
  0x91   : > { %782 = vmatpush.msra.mxu1 %v716_v63 }
  0x92   : > { %907 = vmatpush.msrb.mxu3 %v879_v56 }
  0xef   : > { %v574_v7 = vpop.f32.mrf.mxu1 }
  0xf0   : > { %v1873_v8 = vadd.f32 %v574_v7, %v552_v6  ;;  %v703_v6 = vld [vmem:[%s2106_s8] sm:$0xff]  ;;  %v713_v7 = vld [vmem:[%s2106_s8 + $0x50] sm:$0xff] }
  0xf1   : > { %766 = vmatpush.msra.mxu0 %v703_v6  ;;  %783 = vmatpush.msra.mxu1 %v713_v7  ;;  %v874_v6 = vld [vmem:[#allocation13 + $0x58] sm:$0xff]  ;;  %v871_v7 = vld [vmem:[#allocation13 + $0x40] sm:$0xff] }
  0xf2   : > { %v578_v9 = vsel %vm577_vm1, %v1873_v8, 0.0  ;;  %v589_v10 = vmul.f32 %v1873_v8, %v1873_v8 }
  0xf3   : > { %579 = vadd.xlane.f32.xlu0 %v578_v9  ;;  %v738_v9 = vld [vmem:[%s2106_s8 + $0x118] sm:$0xff]  ;;  %920 = vmatpush.msrb.mxu0 %v894_v41 }
  0xf4   : > { %v590_v11 = vsel %vm577_vm1, %v589_v10, 0.0  ;;  %v1986_v10 = vld [vmem:[#allocation2] sm:$0xff]  ;;  %795 = vmatpush.msrb.mxu2 %v738_v9 }
  0xf5   : > { %767 = vmatmul.f32.vlgmr.msra.gmra.mxu0 %v1986_v10 }
  0xf6   : > { %796 = vmatpush.msrb.mxu2 %v735_v12 }
  0xf8   : > { %797 = vmatpush.msrb.mxu2 %v732_v14  ;;  %v870_v14 = vld [vmem:[#allocation13 + $0x38] sm:$0xff] }
  0xfa   : > { %798 = vmatpush.msrb.mxu2 %v729_v16 }
  0xfb   : > { %591 = vadd.xlane.f32.xlu0 %v590_v11  ;;  %v710_v11 = vld [vmem:[%s2106_s8 + $0x38] sm:$0xff] }
  0xfc   : > { %784 = vmatpush.msra.mxu1 %v710_v11  ;;  %799 = vmatpush.msrb.mxu2 %v726_v17  ;;  %v872_v11 = vld [vmem:[#allocation13 + $0x48] sm:$0xff]  ;;  %v867_v17 = vld [vmem:[#allocation13 + $0x20] sm:$0xff] }
  0xfe   : > { %785 = vmatpush.msra.mxu1 %v707_v13  ;;  %800 = vmatpush.msrb.mxu2 %v723_v20  ;;  %v869_v13 = vld [vmem:[#allocation13 + $0x30] sm:$0xff] }
  0xff   : > { %v865_v20 = vld [vmem:[#allocation13 + $0x10] sm:$0xff] }
 0x100   : > { %786 = vmatpush.msra.mxu1 %v704_v15  ;;  %801 = vmatpush.msrb.mxu2 %v720_v22 }
 0x102   : > { %802 = vmatpush.msrb.mxu2 %v717_v24  ;;  %v864_v24 = vld [vmem:[#allocation13 + $0x8] sm:$0xff] }
 0x104   : > { %803 = vmatpush.msrb.mxu2 %v714_v26 }
 0x106   : > { %804 = vmatpush.msrb.mxu2 %v711_v28 }
 0x108   : > { %805 = vmatpush.msrb.mxu2 %v708_v32 }
 0x10a   : > { %806 = vmatpush.msrb.mxu2 %v705_v35 }
 0x166   : > { %v580_v39 = vpop.xlane.xlu0 %579 }
 0x167   : > { %v1946_v52 = vmul.f32 %v587_v43, %v580_v39 }
 0x169   : > { %v595_v0 = vmul.f32 %v1946_v52, %v1946_v52  ;;  %v594_v30 = vsub.f32 %v1873_v8, %v1946_v52  ;;  %v1274_v8 = vld [vmem:[%s534_s30] ss:$0 sm:$0xff]  ;;  %v884_v52 = vld [vmem:[#allocation13 + $0xa8] sm:$0xff] }
 0x16e   : > { %v592_v61 = vpop.xlane.xlu0 %591 }
 0x16f   : > { %v593_v1 = vmul.f32 %v592_v61, %v587_v43  ;;  %v892_v43 = vld [vmem:[#allocation13 + $0xe8] sm:$0xff]  ;;  %v877_v61 = vld [vmem:[#allocation13 + $0x70] sm:$0xff] }
 0x170   : > { %921 = vmatpush.msrb.mxu0 %v892_v43  ;;  %908 = vmatpush.msrb.mxu3 %v877_v61 }
 0x171   : > { %v596_v3 = vsub.f32 %v593_v1, %v595_v0  ;;  %v635_v0 = vperm.slane %v2045_v50, 1  ;;  %v875_v1 = vld [vmem:[#allocation13 + $0x60] sm:$0xff] }
 0x172   : > { %922 = vmatpush.msrb.mxu0 %v890_v45  ;;  %v768_v59 = vpop.f32.mrf.mxu0  ;;  %909 = vmatpush.msrb.mxu3 %v875_v1 }
 0x173   : > { %v597_v4 = vadd.f32 1e-05, %v596_v3 }
 0x174   : > { %923 = vmatpush.msrb.mxu0 %v888_v47 }
 0x175   : > { %1278 = vrsqrt.f32 %v597_v4  ;;  %vm604_vm4 = vweird.f32 %v597_v4 }
 0x176   : > { %924 = vmatpush.msrb.mxu0 %v886_v49 }
 0x178   : > { %925 = vmatpush.msrb.mxu0 %v884_v52 }
 0x17a   : > { %926 = vmatpush.msrb.mxu0 %v882_v55 }
 0x17b   : > { %v1279_v18 = vpop.eup %1278 }
 0x17c   : > { %v599_v19 = vmul.f32 %v1279_v18, %v597_v4  ;;  %vm605_vm3 = vweird.f32 %v1279_v18  ;;  %927 = vmatpush.msrb.mxu0 %v880_v57  ;;  %v873_v4 = vld [vmem:[#allocation13 + $0x50] sm:$0xff] }
 0x17d   : > { %vm606_vm5 = vmor %vm604_vm4, %vm605_vm3  ;;  %910 = vmatpush.msrb.mxu3 %v873_v4 }
 0x17e   : > { %v600_v21 = vmul.f32 %v1279_v18, %v599_v19  ;;  %928 = vmatpush.msrb.mxu0 %v878_v62 }
 0x17f   : > { %911 = vmatpush.msrb.mxu3 %v871_v7 }
 0x180   : > { %v601_v23 = vmul.f32 0.5, %v600_v21  ;;  %929 = vmatpush.msrb.mxu0 %v876_v2  ;;  %v866_v21 = vld [vmem:[#allocation13 + $0x18] sm:$0xff] }
 0x181   : > { %912 = vmatpush.msrb.mxu3 %v869_v13 }
 0x182   : > { %v602_v25 = vsub.f32 1.5, %v601_v23  ;;  %930 = vmatpush.msrb.mxu0 %v874_v6  ;;  %v863_v23 = vld [vmem:[#allocation13] sm:$0xff] }
 0x183   : > { %913 = vmatpush.msrb.mxu3 %v867_v17 }
 0x184   : > { %v603_v27 = vmul.f32 %v1279_v18, %v602_v25  ;;  %931 = vmatpush.msrb.mxu0 %v872_v11 }
 0x185   : > { %914 = vmatpush.msrb.mxu3 %v865_v20 }
 0x186   : > { %v607_v31 = vsel %vm606_vm5, %v1279_v18, %v603_v27  ;;  %v868_v18 = vld [vmem:[#allocation13 + $0x28] sm:$0xff]  ;;  %932 = vmatpush.msrb.mxu0 %v870_v14 }
 0x187   : > { %v608_v34 = vmul.f32 %v607_v31, %v594_v30  ;;  %915 = vmatpush.msrb.mxu3 %v863_v23  ;;  %v1275_v31 = vld [vmem:[#allocation14 + $0x3] ss:$0 sm:$0xff] }
 0x188   : > { %933 = vmatpush.msrb.mxu0 %v868_v18 }
 0x189   : > { %v610_v36 = vmul.f32 %v609_v29, %v608_v34 }
 0x18a   : > { %934 = vmatpush.msrb.mxu0 %v866_v21 }
 0x18b   : > { %v612_v37 = vadd.f32 %v611_v33, %v610_v36 }
 0x18c   : > { %935 = vmatpush.msrb.mxu0 %v864_v24 }
 0x18d   : > { %vm613_vm6 = vcmp.gt.f32.partialorder %v612_v37, 0.0  ;;  %v614_v38 = vmul.f32 0.2, %v612_v37 }
 0x18f   : > { %v615_v39 = vsel %vm613_vm6, %v612_v37, %v614_v38  ;;  %v636_v37 = vperm.slane %v2045_v50, 2 }
 0x190   : > { %v619_v40 = vadd.f32 %v1274_v8, %v615_v39 }
 0x192   : > { %1154 = vmatmul.msk.f32.vlgmr.msrb.gmra.mxu1 %vm577_vm1, %v619_v40  ;;  %1155 = vmatmul.msk.f32.vlgmr.msra.gmra.mxu2 %vm577_vm1, %v619_v40 }
 0x193   : > { %1156 = vmatmul.msk.f32.vlgmr.msra.gmra.mxu3 %vm577_vm1, %v619_v40 }
 0x19a   : > { %787 = vmatmul.f32.vlgmr.msra.gmra.mxu1 %v1986_v10  ;;  %807 = vmatmul.f32.vlgmr.msrb.gmra.mxu2 %v1986_v10 }
 0x20f   : > { %v660_v58 = vpop.f32.mrf.mxu1 }
 0x210   : > { %v661_v60 = vadd.f32 %v660_v58, %v634_v53 }
 0x212   : > { %v811_v63 = vadd.f32 %v768_v59, %v661_v60  ;;  %v548_v59 = vld [vmem:[#allocation14 + $0x4] sm:$0x3] }
 0x213   : > { %v897_v60 = vperm.slane %v548_v59, 1 }
 0x214   : > { %v1157_v3 = vmul.f32 -1.442695, %v811_v63 }
 0x215   : > { %v680_v9 = vpop.f32.mrf.mxu2 }
 0x216   : > { %1280 = vpow2.f32 %v1157_v3  ;;  %v681_v12 = vadd.f32 %v680_v9, %v635_v0  ;;  %v700_v8 = vpop.f32.mrf.mxu3  ;;  %v896_v0 = vperm.slane %v548_v59, 0 }
 0x217   : > { %v788_v15 = vpop.f32.mrf.mxu1  ;;  %v701_v43 = vadd.f32 %v700_v8, %v636_v37 }
 0x218   : > { %v812_v16 = vadd.f32 %v788_v15, %v681_v12 }
 0x21a   : > { %v1158_v19 = vmul.f32 -1.442695, %v812_v16 }
 0x21c   : > { %v1281_v22 = vpop.eup %1280  ;;  %1282 = vpow2.f32 %v1158_v19 }
 0x21d   : > { %v819_v25 = vadd.f32 1.0, %v1281_v22  ;;  %v808_v32 = vpop.f32.mrf.mxu2 }
 0x21e   : > { %v854_v40 = vadd.f32 %v1275_v31, %v808_v32 }
 0x21f   : > { %1284 = vrcp.f32 %v819_v25  ;;  %v832_v33 = vand.u32 2147483648, %v819_v25  ;;  %v830_v35 = vand.u32 2147483647, %v819_v25  ;;  %vm826_vm8 = vweird.f32 %v819_v25 }
 0x221   : > { %v833_v5 = vor.u32 1.1754944e-38, %v832_v33  ;;  %vm831_vm10 = vcmp.eq.f32.partialorder %v830_v35, 8.507059e+37 }
 0x222   : > { %v1283_v26 = vpop.eup %1282 }
 0x223   : > { %v820_v27 = vadd.f32 1.0, %v1283_v26 }
 0x225   : > { %v1285_v28 = vpop.eup %1284  ;;  %1286 = vrcp.f32 %v820_v27  ;;  %v847_v47 = vand.u32 2147483648, %v820_v27  ;;  %v845_v48 = vand.u32 2147483647, %v820_v27  ;;  %vm841_vm12 = vweird.f32 %v820_v27 }
 0x226   : > { %v822_v29 = vmul.f32 %v1285_v28, %v819_v25  ;;  %vm827_vm7 = vweird.f32 %v1285_v28 }
 0x227   : > { %vm828_vm9 = vmor %vm826_vm8, %vm827_vm7  ;;  %v848_v52 = vor.u32 1.1754944e-38, %v847_v47  ;;  %vm846_vm14 = vcmp.eq.f32.partialorder %v845_v48, 8.507059e+37 }
 0x228   : > { %v823_v30 = vsub.f32 1.0, %v822_v29 }
 0x22a   : > { %v824_v34 = vmul.f32 %v1285_v28, %v823_v30 }
 0x22b   : > { %v1287_v36 = vpop.eup %1286 }
 0x22c   : > { %v837_v38 = vmul.f32 %v1287_v36, %v820_v27  ;;  %v825_v39 = vadd.f32 %v1285_v28, %v824_v34  ;;  %vm842_vm11 = vweird.f32 %v1287_v36 }
 0x22d   : > { %vm843_vm13 = vmor %vm841_vm12, %vm842_vm11 }
 0x22e   : > { %v838_v41 = vsub.f32 1.0, %v837_v38  ;;  %v829_v42 = vsel %vm828_vm9, %v1285_v28, %v825_v39 }
 0x22f   : > { %v834_v44 = vsel %vm831_vm10, %v833_v5, %v829_v42 }
 0x230   : > { %v855_v45 = vmul.f32 %v854_v40, %v834_v44  ;;  %v839_v46 = vmul.f32 %v1287_v36, %v838_v41 }
 0x232   : > { %v856_v49 = vadd.f32 %v855_v45, %v701_v43  ;;  %v840_v51 = vadd.f32 %v1287_v36, %v839_v46 }
 0x234   : > { %1288 = vtanh.f32 %v856_v49  ;;  %v844_v50 = vsel %vm843_vm13, %v1287_v36, %v840_v51 }
 0x235   : > { %v849_v53 = vsel %vm846_vm14, %v848_v52, %v844_v50 }
 0x236   : > { %v858_v54 = vsub.f32 1.0, %v849_v53  ;;  %v860_v57 = vmul.f32 %v849_v53, %v1986_v10  ;;  %v544_v10 = vld [vmem:[%s1834_s27] sm:$0xff] }
 0x23a   : > { %v1289_v55 = vpop.eup %1288 }
 0x23b   : > { %v859_v56 = vmul.f32 %v1289_v55, %v858_v54 }
 0x23d   : > { %v861_v58 = vadd.f32 %v860_v57, %v859_v56 }
 0x23f   : > { %862 = vst [vmem:[#allocation2] sm:$0xff] %v861_v58  ;;  %916 = vmatmul.f32.vlgmr.msrb.gmra.mxu3 %v861_v58  ;;  %936 = vmatmul.f32.vlgmr.msrb.gmra.mxu0 %v861_v58 }
 0x2bc   : > { %v937_v61 = vpop.f32.mrf.mxu0 }
 0x2bd   : > { %v938_v62 = vadd.f32 %v937_v61, %v897_v60 }
 0x2bf   : > { %v940_v63 = vmul.f32 0.5, %v938_v62  ;;  %947 = vst [vmem:[%s1860_s22 + $0x10] sm:$0xff] %v938_v62 }
 0x2c1   : > { %v941_v1 = vmul.f32 1.442695, %v940_v63 }
 0x2c2   : > { %v917_v2 = vpop.f32.mrf.mxu3 }
 0x2c3   : > { %1290 = vpow2.f32 %v941_v1  ;;  %v918_v3 = vadd.f32 %v917_v2, %v896_v0 }
 0x2c5   : > { %946 = vst [vmem:[%s1860_s22 + $0x8] sm:$0xff] %v918_v3 }
 0x2c9   : > { %v1291_v4 = vpop.eup %1290 }
 0x2ca   : > { %v943_v6 = vmul.f32 %v1291_v4, %v544_v10  ;;  %951 = sbr.rel (%p1159_p1) target bundleno = 720 (0x2d0), region = 92 }
 0x2cc   : > { %v944_v7 = vadd.f32 %v943_v6, %v918_v3 }
 0x2ce   : > { %945 = vst [vmem:[%s1860_s22] sm:$0xff] %v944_v7 }
 0x2cf   : > { %952 = vst [vmem:[#allocation17] sm:$0xff] %v861_v58 }
 0x2d0 PF: > { %s1166_s20 = smul.u32 24, %s1707_s13  ;;  %s967_s30 = sshll.u32 %s1860_s22, 4  ;;  %s968_s30 = int_to_ptr.vmem [resolvable:$true] %s967_s30 }
 0x2d1   : > { %s1614_s18 = smov [#allocation17]   ;;  %s954_s24 = scalar_lea.sflag [#allocation7], %s1825_s0 }
 0x2d2   : > { %s965_s5 = scalar_lea.hbm %s2109_s11, %s1166_s20  ;;  %s979_s17 = sshll.u32 %s1614_s18, 4  ;;  %s980_s17 = int_to_ptr.vmem [resolvable:$true] %s979_s17 }
 0x2d3   : > { %s969_s27 = sshll.u32 %s965_s5, 4  ;;  %s1504_s7 = scalar_lea.hbm %s2109_s11, 144  ;;  %s970_s27 = int_to_ptr.hbm [resolvable:$true] %s969_s27 }
 0x2d4   : > { %s1498_s28 = sshra.s32 %s970_s27, 4  ;;  %s1499_s28 = int_to_ptr.hbm [resolvable:$true] %s1498_s28 }
 0x2d5   : > { %s1500_s29 = scalar_lea.hbm %s1499_s28, 24  ;;  %p1505_p10 = scmp.lt.s32.totalorder %s1499_s28, %s2109_s11 }
 0x2d6   : > { %p1501_p7 = scmp.ne.s32.totalorder %s1499_s28, %s1500_s29  ;;  %p1506_p13 = scmp.lt.s32.totalorder %s1504_s7, %s1500_s29 }
 0x2d8   : > { %p1502_p9 = pnand %p1501_p7, %p1772_p5  ;;  %p1507_p3 = por %p1506_p13, %p1505_p10 }
 0x2da   : > { %p1503_p8 = pneg %p1502_p9 }
 0x2dc   : > { %p1508_p11 = pnand %p1507_p3, %p1503_p8 }
 0x2de   : > { %1511 = shalt.err (!%p1508_p11)
}
 0x2df   : > { %1187 = dma.vmem_to_hbm [thread:$0]  (%p1772_p5), %s968_s30, 384, %s970_s27, %s954_s24  }
 0x2e0   : > { %s981_s9 = sshll.u32 %s2110_s12, 4  ;;  %p2140_p0 = scmp.eq.s32.totalorder %s1707_s13, 5  ;;  %s982_s9 = int_to_ptr.hbm [resolvable:$true] %s981_s9 }
 0x2e2   : > { %1189 = dma.vmem_to_hbm [thread:$0]  (%p2140_p0), %s980_s17, 128, %s982_s9, [#allocation18]  }
 0x2e3   : > { %p2141_p2 = pmov %p2140_p0 }
 0x2e4   : > { %p2142_p4 = pmov %p2140_p0 }
 0x2e5   : > { %1579 = dma.done.wait (%p2141_p2), [#allocation18], 128  }
 0x2e6   : > { %1581 = vsyncadd (%p2142_p4), [#allocation18], 4294967168 }
 0x2e7 PF: > { %s2143_s25 = sld [smem:[#allocation29_spill]] }
 0x2e8   : > { %s2144_s20 = sld [smem:[#allocation27_spill]] }
 0x2ed   : > { %p1228_p12 = scmp.ge.s32.totalorder %s2143_s25, 2 }
 0x2ee   : > { %s998_s16 = sand.u32 1, %s2144_s20  }
 0x2ef   : > { %p1214_p5 = pnand %p1228_p12, %p1776_p6  ;;  %s999_s30 = scalar_lea.sflag [#allocation7], %s998_s16 }
 0x2f1   : > { %p1215_p1 = pneg %p1214_p5 }
 0x2f3   : > { %1583 = dma.done.wait (%p1215_p1), %s999_s30, 384  }
 0x2f4   : > { %1585 = vsyncadd (%p1215_p1), %s999_s30, 4294966912  ;;  %s2146_s27 = sld [smem:[#allocation30_spill]]  ;;  %s2149_s25 = smov %s1592_s26 }
 0x2f5   : > { %s2147_s21 = sld [smem:[#allocation28_spill]] }
 0x2f6   : > { %s2148_s0 = sld [smem:[#allocation31_spill]] }
 0x2fa   : > { %p40_p7 = scmp.ge.s32.totalorder %s2146_s27, 8  }
 0x2fb   : > { %s2150_s26 = smov %s2147_s21 }
 0x2fc   :  { %42 = sbr.rel (!%p40_p7) target bundleno = 19 (0x13), region = 153 }
 0x301   :  { %1005 = vsyncpa [#allocation6], 1 }
 0x302   :  { %1007 = vsyncpa [#allocation6 + $0x1], 1 }
 0x303   :  { %1008 = vsyncpa [#allocation9], 1 }
 0x304   :  { %1010 = vsyncpa [#allocation9 + $0x1], 1 }
 0x305   :  { %1011 = vsyncpa [#allocation12], 1 }
 0x306   :  { %1012 = vsyncpa [#allocation15], 1 }
 0x307   :  { %1013 = vsyncpa [#allocation7], 1 }
 0x308   :  { %1015 = vsyncpa [#allocation7 + $0x1], 1 }
 0x309   :  { %1016 = vsyncpa [#allocation18], 1 }

</bundles_post_ra>
